<compile_context>
chip_gen: v5e
topology: v5e:2x2
jax: 0.10.0
libtpu: 0.0.40
codegen_flags: <defaults>
</compile_context>

<pallas_src>
import math

import jax
import jax.numpy as jnp
import numpy as np
from jax.experimental import pallas as pl
from jax.experimental.pallas import tpu as pltpu


# --------------------------------------------------------------------------
# helpers: static nearest-neighbor index plumbing (XLA side, strided slices /
# broadcast-replication; no gather chains)
# --------------------------------------------------------------------------

def _nearest_idx(out_size, in_size):
    # PyTorch F.interpolate(mode='nearest'): src = floor(dst * in / out)
    return (np.arange(out_size) * in_size) // out_size


def _take_axis(x, idx, axis):
    """Select rows `idx` along `axis`.  Uses a strided slice when possible."""
    idx = np.asarray(idx)
    n = idx.shape[0]
    if n == 1:
        step = 1
    else:
        d = np.diff(idx)
        step = int(d[0]) if (np.all(d == d[0]) and d[0] > 0) else 0
    if int(idx[0]) == 0 and step > 0:
        sl = [slice(None)] * x.ndim
        sl[axis] = slice(0, int(idx[-1]) + 1, step)
        return x[tuple(sl)]
    return jnp.take(x, jnp.asarray(idx), axis=axis)


def nearest_resize_hw(x, idx_h, idx_w):
    x = _take_axis(x, idx_h, x.ndim - 2)
    return _take_axis(x, idx_w, x.ndim - 1)


def nearest_upsample_hw(x, out_h, out_w):
    H, W = x.shape[-2], x.shape[-1]
    if out_h % H == 0 and out_w % W == 0:
        fh, fw = out_h // H, out_w // W
        lead = x.shape[:-2]
        y = x[..., :, None, :, None]
        y = jnp.broadcast_to(y, lead + (H, fh, W, fw))
        return y.reshape(lead + (out_h, out_w))
    return nearest_resize_hw(x, _nearest_idx(out_h, H), _nearest_idx(out_w, W))


def gaussian_blur_matrix_np(L, sigma, truncate=3):
    """Dense (L, L) matrix equivalent to gaussian_filter_1d with replicate
    ('nearest') padding, as used by GaussianFilterNd."""
    K = int(2 * math.ceil(truncate * sigma) + 1)
    pad = math.ceil((K - 1) / 2)
    grid = np.arange(K) - (K - 1) / 2.0
    k = np.exp(-0.5 * (grid / float(sigma)) ** 2)
    k = k / k.sum()
    M = np.zeros((L, L), dtype=np.float32)
    for i in range(L):
        for t in range(K):
            j = min(max(i + t - pad, 0), L - 1)
            M[i, j] += k[t]
    return M


def blur_upsample_matrices(Hs, Ws, rh, rw, sigma, truncate):
    """Gaussian-blur matrices with the nearest upsample (rh,rw)->(Hs,Ws)
    folded in:  blur(upsample(r)) == (Mh@Uh) @ r @ (Mw@Uw)^T."""
    Mh = gaussian_blur_matrix_np(Hs, sigma, truncate)
    Mw = gaussian_blur_matrix_np(Ws, sigma, truncate)
    Uh = np.zeros((Hs, rh), np.float32)
    Uh[np.arange(Hs), _nearest_idx(Hs, rh)] = 1.0
    Uw = np.zeros((Ws, rw), np.float32)
    Uw[np.arange(Ws), _nearest_idx(Ws, rw)] = 1.0
    mhU = Mh @ Uh                      # (Hs, rh)
    umwT = (Mw @ Uw).T                 # (rw, Ws)
    return jnp.asarray(mhU, jnp.float32), jnp.asarray(umwT, jnp.float32)


def upsample_logcount(H, W, Hs, Ws):
    """Per-saliency-pixel log replication count of the nearest upsample
    (Hs,Ws)->(H,W).  Makes the saliency-resolution logsumexp exact:
    LSE_fullres(x_up) == LSE_salres(x + logcount)."""
    cnt_h = np.bincount(np.asarray(_nearest_idx(H, Hs)), minlength=Hs).astype(np.float64)
    cnt_w = np.bincount(np.asarray(_nearest_idx(W, Ws)), minlength=Ws).astype(np.float64)
    logcnt = np.log(cnt_h)[:, None] + np.log(cnt_w)[None, :]
    return jnp.asarray(logcnt, jnp.float32)


# --------------------------------------------------------------------------
# Pallas kernel 1: fused pointwise stack (features + concat + readout net)
# layout: channels on sublanes, pixels on lanes (lane-dense loads & stores),
# grid over (batch, pixel tiles); big tiles, no prologue transpose/pad.
# --------------------------------------------------------------------------

def _readout_stack_kernel(x_ref, fw_ref, fb_ref, w0_ref, b0_ref,
                          w1_ref, b1_ref, w2_ref, b2_ref, o_ref):
    x = x_ref[...]                                     # (Cin, TP) f32
    fw = fw_ref[...]                                   # (2Cf, Cin)
    cin = x.shape[0]

    # merged feature 1x1 convs (both levels), K == Cin (tiny) -> VPU FMA unroll
    f = fb_ref[...] + fw[:, 0:1] * x[0:1, :]           # (2Cf, TP)
    for c in range(1, cin):
        f = f + fw[:, c:c + 1] * x[c:c + 1, :]
    f = jnp.maximum(f, 0.0)

    # readout network: two MXU hops + a sublane-reduce projection
    h0 = jnp.maximum(
        jnp.dot(w0_ref[...], f, preferred_element_type=jnp.float32)
        + b0_ref[...], 0.0)                            # (C0, TP)
    h1 = jnp.maximum(
        jnp.dot(w1_ref[...], h0, preferred_element_type=jnp.float32)
        + b1_ref[...], 0.0)                            # (C1, TP)
    o_ref[...] = (jnp.sum(w2_ref[...] * h1, axis=0, keepdims=True)
                  + b2_ref[...])                       # (1, TP), lane-dense


def fused_readout_stack(x_r, params, *, max_tile=64 * 1024):
    """x_r: (B, Cin, rh, rw) -> readout (B, rh, rw)."""
    assert max_tile % 128 == 0
    B, Cin, rh, rw = x_r.shape
    L = rh * rw
    x_l = x_r.reshape(B, Cin, L).astype(jnp.float32)   # natural layout, no transpose

    # tile: full row if it fits, else a large 128-multiple tile (partial last
    # block is handled by Pallas; invalid lanes are never written back).
    tp = L if L <= max_tile else max_tile
    n_tiles = pl.cdiv(L, tp)

    Cf = params["feat_w"][0].shape[1]
    # merged feature weights: output channels = [level0 ; level1]
    fw = jnp.concatenate([params["feat_w"][0].T,
                          params["feat_w"][1].T], axis=0).astype(jnp.float32)   # (2Cf, Cin)
    fb = jnp.concatenate([params["feat_b"][0],
                          params["feat_b"][1]], axis=0).reshape(2 * Cf, 1).astype(jnp.float32)
    w0 = params["ro_w0"].T.astype(jnp.float32)          # (C0, 2Cf) - matches [f0; f1]
    b0 = params["ro_b0"].reshape(-1, 1).astype(jnp.float32)
    w1 = params["ro_w1"].T.astype(jnp.float32)          # (C1, C0)
    b1 = params["ro_b1"].reshape(-1, 1).astype(jnp.float32)
    w2 = params["ro_w2"].astype(jnp.float32)             # (C1, 1)
    b2 = params["ro_b2"].reshape(1, 1).astype(jnp.float32)

    def wspec(a):
        return pl.BlockSpec(a.shape, lambda b, i: (0, 0))

    out = pl.pallas_call(
        _readout_stack_kernel,
        grid=(B, n_tiles),
        in_specs=[
            pl.BlockSpec((None, Cin, tp), lambda b, i: (b, 0, i)),
            wspec(fw), wspec(fb), wspec(w0), wspec(b0),
            wspec(w1), wspec(b1), wspec(w2), wspec(b2),
        ],
        out_specs=pl.BlockSpec((None, 1, tp), lambda b, i: (b, 0, i)),
        out_shape=jax.ShapeDtypeStruct((B, 1, L), jnp.float32),
        compiler_params=pltpu.CompilerParams(
            dimension_semantics=("parallel", "parallel"),
            vmem_limit_bytes=48 * 1024 * 1024),
    )(x_l, fw, fb, w0, b0, w1, b1, w2, b2)
    return out[:, 0, :].reshape(B, rh, rw)


# --------------------------------------------------------------------------
# Pallas kernel 2: finalizer — (folded upsample + gaussian blur) as two
# matmuls, weighted center-bias add, and the EXACT logsumexp normalization at
# saliency resolution (replication-count weighted, so no full-res pass ever).
# --------------------------------------------------------------------------

def _finalize_kernel(r_ref, mh_ref, mw_ref, dcb_ref, logcnt_ref, cbw_ref, o_ref):
    z = jnp.dot(mh_ref[...], r_ref[0], preferred_element_type=jnp.float32)   # (Hs, rw)
    z = jnp.dot(z, mw_ref[...], preferred_element_type=jnp.float32)          # (Hs, Ws)
    combined = z + cbw_ref[0] * dcb_ref[0]
    # exact full-resolution logsumexp, computed at saliency resolution
    w = combined + logcnt_ref[...]
    m = jnp.max(w)
    lse = m + jnp.log(jnp.sum(jnp.exp(w - m)))
    o_ref[0] = combined - lse


def finalize_saliency(readout, mhU, umwT, dcb, logcnt, cbw):
    """readout: (B, rh, rw); dcb: (B, Hs, Ws) -> normalized (B, Hs, Ws)."""
    B, rh, rw = readout.shape
    Hs, Ws = logcnt.shape
    return pl.pallas_call(
        _finalize_kernel,
        grid=(B,),
        in_specs=[
            pl.BlockSpec((1, rh, rw), lambda b: (b, 0, 0)),
            pl.BlockSpec((Hs, rh), lambda b: (0, 0)),
            pl.BlockSpec((rw, Ws), lambda b: (0, 0)),
            pl.BlockSpec((1, Hs, Ws), lambda b: (b, 0, 0)),
            pl.BlockSpec((Hs, Ws), lambda b: (0, 0)),
            pl.BlockSpec(memory_space=pltpu.MemorySpace.SMEM),
        ],
        out_specs=pl.BlockSpec((1, Hs, Ws), lambda b: (b, 0, 0)),
        out_shape=jax.ShapeDtypeStruct((B, Hs, Ws), jnp.float32),
        compiler_params=pltpu.CompilerParams(
            dimension_semantics=("parallel",),
            vmem_limit_bytes=32 * 1024 * 1024),
    )(readout.astype(jnp.float32), mhU, umwT, dcb.astype(jnp.float32),
      logcnt, cbw.astype(jnp.float32))


# --------------------------------------------------------------------------
# DeepGazeII forward
# --------------------------------------------------------------------------

def deepgaze2_forward(params, x, centerbias, *, downsample=2, readout_factor=4,
                      saliency_map_factor=2, sigma=8.0, truncate=3):
    B, C, H, W = x.shape

    # 1+2+3. stimulus downsample -> features -> resize to the readout grid.
    #   The synthetic backbone is purely pointwise (1x1 conv + ReLU), so the
    #   nearest resize commutes with it and the whole stack runs directly at
    #   readout resolution on composed nearest indices.
    #   (Not valid for a real spatial-conv VGG backbone.)
    Hd, Wd = H // downsample, W // downsample
    rh = math.ceil(H / downsample / readout_factor)
    rw = math.ceil(W / downsample / readout_factor)
    idx_h = _nearest_idx(Hd, H)[_nearest_idx(rh, Hd)]
    idx_w = _nearest_idx(Wd, W)[_nearest_idx(rw, Wd)]
    x_r = nearest_resize_hw(x, idx_h, idx_w)                      # (B, C, rh, rw)

    # 2-4. fused feature + readout network -> (B, rh, rw) single-channel map
    readout = fused_readout_stack(x_r, params)

    # 5. finalizer: downscale center bias, (upsample+blur) readout, add
    #    weighted center bias, exact normalization at saliency resolution.
    Hs, Ws = H // saliency_map_factor, W // saliency_map_factor
    dcb = nearest_resize_hw(centerbias, _nearest_idx(Hs, H), _nearest_idx(Ws, W))

    mhU, umwT = blur_upsample_matrices(Hs, Ws, rh, rw, sigma, truncate)
    logcnt = upsample_logcount(H, W, Hs, Ws)

    sal = finalize_saliency(readout, mhU, umwT, dcb, logcnt,
                            params["center_bias_weight"])

    # final nearest upsample to stimulus size (normalization already exact)
    return nearest_upsample_hw(sal, H, W)


# --------------------------------------------------------------------------
# Main
# --------------------------------------------------------------------------

if __name__ == "__main__":
    key = jax.random.PRNGKey(0)
    ks = jax.random.split(key, 8)

    # deterministic synthetic parameters
    C_in, C_feat = 3, 8
    params = {
        "feat_w": [0.1 * jax.random.normal(ks[0], (C_in, C_feat), jnp.float32),
                   0.1 * jax.random.normal(ks[1], (C_in, C_feat), jnp.float32)],
        "feat_b": [jnp.zeros((C_feat,), jnp.float32),
                   jnp.zeros((C_feat,), jnp.float32)],
        "ro_w0": 0.1 * jax.random.normal(ks[2], (2 * C_feat, 16), jnp.float32),
        "ro_b0": jnp.zeros((16,), jnp.float32),
        "ro_w1": 0.1 * jax.random.normal(ks[3], (16, 8), jnp.float32),
        "ro_b1": jnp.zeros((8,), jnp.float32),
        "ro_w2": 0.1 * jax.random.normal(ks[4], (8, 1), jnp.float32),
        "ro_b2": jnp.zeros((1,), jnp.float32),
        "center_bias_weight": jnp.array([1.0], jnp.float32),   # Finalizer param
    }

    # small example inputs: x (B,C,H,W) NCHW, centerbias (B,H,W)
    B, H, W = 2, 64, 64
    x = jax.random.normal(ks[5], (B, C_in, H, W), jnp.float32)
    centerbias = jax.random.normal(ks[6], (B, H, W), jnp.float32) * 0.1

    out = deepgaze2_forward(params, x, centerbias,
                            downsample=2, readout_factor=4,
                            saliency_map_factor=2, sigma=8.0, truncate=3)
    out = jax.block_until_ready(out)

    # sanity: output is a per-image log probability map over (H, W)
    assert out.shape == (B, H, W)
    assert np.all(np.isfinite(np.asarray(out)))
    sums = np.asarray(jnp.exp(out).sum(axis=(1, 2)))
    assert np.allclose(sums, 1.0, atol=1e-3), sums

    print("KERNEL_OK")
</pallas_src>

<mosaic_0001>
module attributes {stable_mosaic.version = 11 : i64} {
  func.func @_readout_stack_kernel(%arg0: i32, %arg1: i32, %arg2: memref<1x3x64xf32, #tpu.memory_space<vmem>>, %arg3: memref<16x3xf32, #tpu.memory_space<vmem>>, %arg4: memref<16x1xf32, #tpu.memory_space<vmem>>, %arg5: memref<16x16xf32, #tpu.memory_space<vmem>>, %arg6: memref<16x1xf32, #tpu.memory_space<vmem>>, %arg7: memref<8x16xf32, #tpu.memory_space<vmem>>, %arg8: memref<8x1xf32, #tpu.memory_space<vmem>>, %arg9: memref<8x1xf32, #tpu.memory_space<vmem>>, %arg10: memref<1x1xf32, #tpu.memory_space<vmem>>, %arg11: memref<1x1x64xf32, #tpu.memory_space<vmem>>) attributes {dimension_semantics = [#tpu.dimension_semantics<parallel>, #tpu.dimension_semantics<parallel>], iteration_bounds = array<i64: 2, 1>, scalar_prefetch = 0 : i64, scratch_operands = 0 : i64, tpu.core_type = #tpu.core_type<tc>, window_params = [{transform_indices = @transform_0, window_bounds = array<i64: 1, 3, 64>}, {pipeline_mode = #tpu.pipeline_mode<synchronous>, transform_indices = @transform_1, window_bounds = array<i64: 16, 3>}, {pipeline_mode = #tpu.pipeline_mode<synchronous>, transform_indices = @transform_2, window_bounds = array<i64: 16, 1>}, {pipeline_mode = #tpu.pipeline_mode<synchronous>, transform_indices = @transform_3, window_bounds = array<i64: 16, 16>}, {pipeline_mode = #tpu.pipeline_mode<synchronous>, transform_indices = @transform_4, window_bounds = array<i64: 16, 1>}, {pipeline_mode = #tpu.pipeline_mode<synchronous>, transform_indices = @transform_5, window_bounds = array<i64: 8, 16>}, {pipeline_mode = #tpu.pipeline_mode<synchronous>, transform_indices = @transform_6, window_bounds = array<i64: 8, 1>}, {pipeline_mode = #tpu.pipeline_mode<synchronous>, transform_indices = @transform_7, window_bounds = array<i64: 8, 1>}, {pipeline_mode = #tpu.pipeline_mode<synchronous>, transform_indices = @transform_8, window_bounds = array<i64: 1, 1>}, {transform_indices = @transform_9, window_bounds = array<i64: 1, 1, 64>}]} {
    %c0 = arith.constant 0 : index
    %c0_0 = arith.constant 0 : index
    %c0_1 = arith.constant 0 : index
    %0 = vector.load %arg2[%c0, %c0_0, %c0_1] : memref<1x3x64xf32, #tpu.memory_space<vmem>>, vector<1x3x64xf32>
    %1 = vector.shape_cast %0 : vector<1x3x64xf32> to vector<3x64xf32>
    %c0_2 = arith.constant 0 : index
    %c0_3 = arith.constant 0 : index
    %2 = vector.load %arg3[%c0_2, %c0_3] : memref<16x3xf32, #tpu.memory_space<vmem>>, vector<16x3xf32>
    %c0_4 = arith.constant 0 : index
    %c0_5 = arith.constant 0 : index
    %3 = vector.load %arg4[%c0_4, %c0_5] : memref<16x1xf32, #tpu.memory_space<vmem>>, vector<16x1xf32>
    %4 = vector.extract_strided_slice %2 {offsets = [0, 0], sizes = [16, 1], strides = [1, 1]} : vector<16x3xf32> to vector<16x1xf32>
    %5 = vector.extract_strided_slice %1 {offsets = [0, 0], sizes = [1, 64], strides = [1, 1]} : vector<3x64xf32> to vector<1x64xf32>
    %6 = vector.broadcast %4 : vector<16x1xf32> to vector<16x64xf32>
    %7 = vector.broadcast %5 : vector<1x64xf32> to vector<16x64xf32>
    %8 = arith.mulf %6, %7 : vector<16x64xf32>
    %9 = vector.broadcast %3 : vector<16x1xf32> to vector<16x64xf32>
    %10 = arith.addf %9, %8 : vector<16x64xf32>
    %11 = vector.extract_strided_slice %2 {offsets = [0, 1], sizes = [16, 1], strides = [1, 1]} : vector<16x3xf32> to vector<16x1xf32>
    %12 = vector.extract_strided_slice %1 {offsets = [1, 0], sizes = [1, 64], strides = [1, 1]} : vector<3x64xf32> to vector<1x64xf32>
    %13 = vector.broadcast %11 : vector<16x1xf32> to vector<16x64xf32>
    %14 = vector.broadcast %12 : vector<1x64xf32> to vector<16x64xf32>
    %15 = arith.mulf %13, %14 : vector<16x64xf32>
    %16 = arith.addf %10, %15 : vector<16x64xf32>
    %17 = vector.extract_strided_slice %2 {offsets = [0, 2], sizes = [16, 1], strides = [1, 1]} : vector<16x3xf32> to vector<16x1xf32>
    %18 = vector.extract_strided_slice %1 {offsets = [2, 0], sizes = [1, 64], strides = [1, 1]} : vector<3x64xf32> to vector<1x64xf32>
    %19 = vector.broadcast %17 : vector<16x1xf32> to vector<16x64xf32>
    %20 = vector.broadcast %18 : vector<1x64xf32> to vector<16x64xf32>
    %21 = arith.mulf %19, %20 : vector<16x64xf32>
    %22 = arith.addf %16, %21 : vector<16x64xf32>
    %cst = arith.constant 0.000000e+00 : f32
    %23 = vector.broadcast %cst : f32 to vector<16x64xf32>
    %24 = arith.maximumf %22, %23 : vector<16x64xf32>
    %c0_6 = arith.constant 0 : index
    %c0_7 = arith.constant 0 : index
    %25 = vector.load %arg5[%c0_6, %c0_7] : memref<16x16xf32, #tpu.memory_space<vmem>>, vector<16x16xf32>
    %cst_8 = arith.constant dense<0.000000e+00> : vector<16x64xf32>
    %26 = tpu.matmul %25, %24, %cst_8 {dimension_numbers = #tpu.dot_dimension_numbers<[1], [0], [0], [1], [0, 0, 1, 1], [], []>} : vector<16x16xf32>, vector<16x64xf32>, vector<16x64xf32> -> vector<16x64xf32>
    %c0_9 = arith.constant 0 : index
    %c0_10 = arith.constant 0 : index
    %27 = vector.load %arg6[%c0_9, %c0_10] : memref<16x1xf32, #tpu.memory_space<vmem>>, vector<16x1xf32>
    %28 = vector.broadcast %27 : vector<16x1xf32> to vector<16x64xf32>
    %29 = arith.addf %26, %28 : vector<16x64xf32>
    %cst_11 = arith.constant 0.000000e+00 : f32
    %30 = vector.broadcast %cst_11 : f32 to vector<16x64xf32>
    %31 = arith.maximumf %29, %30 : vector<16x64xf32>
    %c0_12 = arith.constant 0 : index
    %c0_13 = arith.constant 0 : index
    %32 = vector.load %arg7[%c0_12, %c0_13] : memref<8x16xf32, #tpu.memory_space<vmem>>, vector<8x16xf32>
    %cst_14 = arith.constant dense<0.000000e+00> : vector<8x64xf32>
    %33 = tpu.matmul %32, %31, %cst_14 {dimension_numbers = #tpu.dot_dimension_numbers<[1], [0], [0], [1], [0, 0, 1, 1], [], []>} : vector<8x16xf32>, vector<16x64xf32>, vector<8x64xf32> -> vector<8x64xf32>
    %c0_15 = arith.constant 0 : index
    %c0_16 = arith.constant 0 : index
    %34 = vector.load %arg8[%c0_15, %c0_16] : memref<8x1xf32, #tpu.memory_space<vmem>>, vector<8x1xf32>
    %35 = vector.broadcast %34 : vector<8x1xf32> to vector<8x64xf32>
    %36 = arith.addf %33, %35 : vector<8x64xf32>
    %cst_17 = arith.constant 0.000000e+00 : f32
    %37 = vector.broadcast %cst_17 : f32 to vector<8x64xf32>
    %38 = arith.maximumf %36, %37 : vector<8x64xf32>
    %c0_18 = arith.constant 0 : index
    %c0_19 = arith.constant 0 : index
    %39 = vector.load %arg9[%c0_18, %c0_19] : memref<8x1xf32, #tpu.memory_space<vmem>>, vector<8x1xf32>
    %40 = vector.broadcast %39 : vector<8x1xf32> to vector<8x64xf32>
    %41 = arith.mulf %40, %38 : vector<8x64xf32>
    %cst_20 = arith.constant dense<0.000000e+00> : vector<64xf32>
    %42 = vector.multi_reduction <add>, %41, %cst_20 [0] : vector<8x64xf32> to vector<64xf32>
    %43 = vector.shape_cast %42 : vector<64xf32> to vector<1x64xf32>
    %c0_21 = arith.constant 0 : index
    %c0_22 = arith.constant 0 : index
    %44 = vector.load %arg10[%c0_21, %c0_22] : memref<1x1xf32, #tpu.memory_space<vmem>>, vector<1x1xf32>
    %45 = vector.broadcast %44 : vector<1x1xf32> to vector<1x64xf32>
    %46 = arith.addf %43, %45 : vector<1x64xf32>
    %c0_23 = arith.constant 0 : index
    %c0_24 = arith.constant 0 : index
    %c0_25 = arith.constant 0 : index
    %47 = vector.load %arg11[%c0_23, %c0_24, %c0_25] : memref<1x1x64xf32, #tpu.memory_space<vmem>>, vector<1x1x64xf32>
    %48 = vector.shape_cast %47 : vector<1x1x64xf32> to vector<1x64xf32>
    %49 = vector.shape_cast %46 : vector<1x64xf32> to vector<1x1x64xf32>
    tpu.vector_store %arg11[%c0_23, %c0_24, %c0_25], %49 {strides = array<i32>} : memref<1x1x64xf32, #tpu.memory_space<vmem>>, vector<1x1x64xf32>,
    return
  }
  func.func @transform_0(%arg0: i32, %arg1: i32) -> (i32, i32, i32) {
    %c0_i32 = arith.constant 0 : i32
    %c0_i32_0 = arith.constant 0 : i32
    return %arg0, %c0_i32, %arg1 : i32, i32, i32
  }
  func.func @transform_1(%arg0: i32, %arg1: i32) -> (i32, i32) {
    %c0_i32 = arith.constant 0 : i32
    %c0_i32_0 = arith.constant 0 : i32
    %c0_i32_1 = arith.constant 0 : i32
    return %c0_i32, %c0_i32_0 : i32, i32
  }
  func.func @transform_2(%arg0: i32, %arg1: i32) -> (i32, i32) {
    %c0_i32 = arith.constant 0 : i32
    %c0_i32_0 = arith.constant 0 : i32
    %c0_i32_1 = arith.constant 0 : i32
    return %c0_i32, %c0_i32_0 : i32, i32
  }
  func.func @transform_3(%arg0: i32, %arg1: i32) -> (i32, i32) {
    %c0_i32 = arith.constant 0 : i32
    %c0_i32_0 = arith.constant 0 : i32
    %c0_i32_1 = arith.constant 0 : i32
    return %c0_i32, %c0_i32_0 : i32, i32
  }
  func.func @transform_4(%arg0: i32, %arg1: i32) -> (i32, i32) {
    %c0_i32 = arith.constant 0 : i32
    %c0_i32_0 = arith.constant 0 : i32
    %c0_i32_1 = arith.constant 0 : i32
    return %c0_i32, %c0_i32_0 : i32, i32
  }
  func.func @transform_5(%arg0: i32, %arg1: i32) -> (i32, i32) {
    %c0_i32 = arith.constant 0 : i32
    %c0_i32_0 = arith.constant 0 : i32
    %c0_i32_1 = arith.constant 0 : i32
    return %c0_i32, %c0_i32_0 : i32, i32
  }
  func.func @transform_6(%arg0: i32, %arg1: i32) -> (i32, i32) {
    %c0_i32 = arith.constant 0 : i32
    %c0_i32_0 = arith.constant 0 : i32
    %c0_i32_1 = arith.constant 0 : i32
    return %c0_i32, %c0_i32_0 : i32, i32
  }
  func.func @transform_7(%arg0: i32, %arg1: i32) -> (i32, i32) {
    %c0_i32 = arith.constant 0 : i32
    %c0_i32_0 = arith.constant 0 : i32
    %c0_i32_1 = arith.constant 0 : i32
    return %c0_i32, %c0_i32_0 : i32, i32
  }
  func.func @transform_8(%arg0: i32, %arg1: i32) -> (i32, i32) {
    %c0_i32 = arith.constant 0 : i32
    %c0_i32_0 = arith.constant 0 : i32
    %c0_i32_1 = arith.constant 0 : i32
    return %c0_i32, %c0_i32_0 : i32, i32
  }
  func.func @transform_9(%arg0: i32, %arg1: i32) -> (i32, i32, i32) {
    %c0_i32 = arith.constant 0 : i32
    %c0_i32_0 = arith.constant 0 : i32
    return %arg0, %c0_i32, %arg1 : i32, i32, i32
  }
}

</mosaic_0001>

<bundles_post_ra>
// kernel: tpu_custom_call.1
= control target key start
LH: loop header
LB: loop body
LE: loop exit
PB: predicated region body
PF: predicated region fallthrough
CT: control target
= control target key end

     0   :  { %s945_s0 = inlined_call_operand.vmem [shape: f32[2,3,64], index: 0, kind: input, shape index: {}]   ;;  %s946_s1 = inlined_call_operand.vmem [shape: f32[16,3], index: 1, kind: input, shape index: {}]   ;;  %s947_s2 = inlined_call_operand.vmem [shape: f32[16,1], index: 2, kind: input, shape index: {}]   ;;  %s948_s3 = inlined_call_operand.vmem [shape: f32[16,16], index: 3, kind: input, shape index: {}]   ;;  %s949_s4 = inlined_call_operand.vmem [shape: f32[16,1], index: 4, kind: input, shape index: {}]   ;;  %s950_s5 = inlined_call_operand.vmem [shape: f32[8,16], index: 5, kind: input, shape index: {}]   ;;  %s951_s6 = inlined_call_operand.vmem [shape: f32[8,1], index: 6, kind: input, shape index: {}]   ;;  %s952_s7 = inlined_call_operand.vmem [shape: f32[8,1], index: 7, kind: input, shape index: {}]   ;;  %s953_s8 = inlined_call_operand.<no memory space> [shape: f32[1,1], index: 8, kind: input, shape index: {}]   ;;  %s954_s9 = inlined_call_operand.hbm [shape: f32[2,1,64], index: 9, kind: output, shape index: {}]  }
   0x1   :  { %v14_v0 = vstv %s953_s8 }
   0x2   :  { %15 = vst [vmem:[#allocation2] sm:$0x1] %v14_v0 }
   0x3   :  { %16 = vsyncpa [#allocation4], 0 }
   0x4   :  { %18 = vsyncpa [#allocation4 + $0x1], 0  ;;  %s812_s11 = smov 0   ;;  %s814_s12 = smov 0  }
   0x5   :  { %s816_s13 = smov 0   ;;  %s818_s14 = smov 0  }
   0x6   :  { %s820_s15 = smov 0   ;;  %s822_s16 = smov 0  }
   0x7 LB: > { %s595_s8 = sadd.s32 4294967295, %s754_s16   ;;  %s596_s17 = sadd.s32 4294967294, %s754_s16   ;;  %s754_s16 = sphi %s822_s16, %s24_s16   ;;  %s750_s15 = sphi %s820_s15, %s961_s15   ;;  %s746_s14 = sphi %s818_s14, %s960_s14   ;;  %s742_s13 = sphi %s816_s13, %s959_s13   ;;  %s738_s12 = sphi %s814_s12, %s958_s12   ;;  %s734_s11 = sphi %s812_s11, %s957_s11  }
   0x8   : > { %s36_s18 = sadd.s32 1, %s750_s15  ;;  %s241_s19 = sadd.s32 1, %s742_s13 }
   0x9   : > { %p38_p0 = scmp.ge.s32.totalorder %s36_s18, 2  ;;  %p251_p1 = scmp.ne.s32.totalorder %s742_s13, %s738_s12 }
   0xa   : > { %p252_p2 = scmp.eq.s32.totalorder %s595_s8, 1  ;;  %p257_p3 = scmp.ne.s32.totalorder %s738_s12, %s734_s11 }
   0xb   : > { %s963_s18 = smov (%p38_p0, %s36_s18), 0  ;;  %p258_p5 = scmp.eq.s32.totalorder %s596_s17, 1 }
   0xc   : > { %p852_p4 = por %p252_p2, %p251_p1  ;;  %s236_s21 = ssub.s32 %s750_s15, %s963_s18 }
   0xd   : > { %p599_p6 = scmp.ge.s32.totalorder %s754_s16, 1  ;;  %p239_p7 = scmp.eq.s32.totalorder %s236_s21, 0 }
   0xe   : > { %p859_p8 = por %p258_p5, %p257_p3  ;;  %p310_p9 = scmp.lt.s32.totalorder %s754_s16, 3 }
   0xf   : > { %s865_s23 = scalar_select %p239_p7, %s742_s13, %s241_s19  }
  0x10   : > { %p311_p10 = pnand %p599_p6, %p310_p9 }
  0x11   : > { %p347_p11 = scmp.lt.s32.totalorder (!%p311_p10), %s746_s14, 1  ;;  %s345_s27 = sand.u32 (!%p311_p10), 1, %s738_s12  }
  0x12   : > { %314 = sbr.rel (%p311_p10) target bundleno = 455 (0x1c7), region = 56  ;;  %s524_s30 = scalar_lea.hbm (!%p311_p10), %s954_s9, %s746_s14 }
  0x13   : > { %s346_s10 = scalar_lea.vmem (!%p311_p10), [#allocation3], %s345_s27  ;;  %s528_s17 = sshll.u32 (!%p311_p10), %s524_s30, 4  ;;  %s529_s17 = int_to_ptr.hbm [resolvable:$true] %s528_s17 }
  0x14   : > { %s515_s19 = scalar_lea.sflag (!%p311_p10), [#allocation4], %s345_s27  ;;  %s690_s21 = sshra.s32 (!%p311_p10), %s529_s17, 4  ;;  %s691_s21 = int_to_ptr.hbm [resolvable:$true] %s690_s21 }
  0x15   : > { %s692_s24 = scalar_lea.hbm (!%p311_p10), %s691_s21, 1  ;;  %s696_s26 = scalar_lea.hbm (!%p311_p10), %s954_s9, 2 }
  0x16   : > { %p693_p12 = scmp.ne.s32.totalorder (!%p311_p10), %s691_s21, %s692_s24  ;;  %p697_p1 = scmp.lt.s32.totalorder (!%p311_p10), %s691_s21, %s954_s9 }
  0x17   : > { %v358_v1 = vld [vmem:[%s947_s2 + $0x8] sm:$0xff]  ;;  %v756_v3 = vmov 0   ;;  %v357_v4 = vld [vmem:[%s947_s2] sm:$0xff]  ;;  %v757_v6 = vmov 1   ;;  %v758_v7 = vmov 2   ;;  %s348_s8 = scalar_select %p347_p11, %s746_s14, 1 }
  0x18   : > { %v356_v2 = vld [vmem:[%s946_s1 + $0x8] sm:$0xff]  ;;  %667 = vset.pattern.permute.xlu1 %v756_v3  ;;  %666 = vset.pattern.permute.xlu0 %v756_v3  ;;  %v355_v5 = vld [vmem:[%s946_s1] sm:$0xff]  ;;  %vm426_vm0 = vcmask 130048   ;;  %vm496_vm1 = vcmask 523264   ;;  %vm512_vm2 = vcmask 516096   ;;  %p694_p13 = pnand %p693_p12, %p852_p4  ;;  %p698_p2 = scmp.lt.s32.totalorder %s696_s26, %s692_s24 }
  0x19   : > { %379 = vperm.xlu1 %667, %v358_v1   ;;  %366 = vperm.xlu0 %666, %v356_v2   ;;  %v414_v8 = vld [vmem:[%s949_s4] sm:$0xff]  ;;  %v415_v9 = vld [vmem:[%s949_s4 + $0x8] sm:$0xff]  ;;  %s600_s25 = sshll.u32 %s348_s8, 2  ;;  %s526_s8 = sshll.u32 %s346_s10, 4  ;;  %s527_s8 = int_to_ptr.vmem [resolvable:$true] %s526_s8 }
  0x1a   : > { %669 = vset.pattern.permute.xlu2 %v756_v3  ;;  %v504_v12 = vld [vmem:[#allocation2] sm:$0x1]  ;;  %s353_s28 = scalar_lea.vmem %s945_s0, %s600_s25  ;;  %v413_v38 = vld [vmem:[%s948_s3 + $0x8] sm:$0xff]  ;;  %p695_p0 = pneg %p694_p13 }
  0x1b   : > { %374 = vperm.xlu2 %669, %v357_v4   ;;  %v459_v14 = vld [vmem:[%s951_s6] sm:$0xff]  ;;  %p699_p3 = por %p698_p2, %p697_p1 }
  0x1c   : > { %v354_v15 = vld [vmem:[%s353_s28] sm:$0x7] }
  0x1d   : > { %v369_v16 = vperm.slane %v354_v15, 0  ;;  %v392_v19 = vperm.slane %v354_v15, 1  ;;  %v405_v24 = vperm.slane %v354_v15, 2  ;;  %v412_v39 = vld [vmem:[%s948_s3] sm:$0xff]  ;;  %p700_p5 = pnand %p699_p3, %p695_p0 }
  0x1e   : > { %v489_v40 = vld [vmem:[%s952_s7] sm:$0xff] }
  0x1f   : > { %v458_v49 = vld [vmem:[%s950_s5] sm:$0xff] }
  0x21   : > { %668 = vset.pattern.permute.xlu1 %v757_v6  ;;  %361 = vperm.xlu0 %666, %v355_v5  }
  0x22   : > { %389 = vperm.xlu1 %668, %v356_v2  }
  0x23   : > { %670 = vset.pattern.permute.xlu2 %v757_v6 }
  0x24   : > { %385 = vperm.xlu2 %670, %v355_v5  }
  0x29   : > { %671 = vset.pattern.permute.xlu0 %v758_v7 }
  0x2a   : > { %672 = vset.pattern.permute.xlu1 %v758_v7  ;;  %402 = vperm.xlu0 %671, %v356_v2  }
  0x2b   : > { %398 = vperm.xlu1 %672, %v355_v5  }
  0x2c   : > { %673 = vset.pattern.permute.xlu2 %v756_v3 }
  0x2d   : > { %423 = vperm.xlu2 %673, %v415_v9  }
  0x32   : > { %675 = vset.pattern.permute.xlu0 %v756_v3 }
  0x33   : > { %674 = vset.pattern.permute.xlu1 %v756_v3  ;;  %492 = vperm.xlu0 %675, %v489_v40  }
  0x34   : > { %418 = vperm.xlu1 %674, %v414_v8  }
  0x35   : > { %462 = vperm.xlu2 %673, %v459_v14  }
  0x3c   : > { %507 = vperm.xlu1 %674, %v504_v12  }
  0x75   : > { %v375_v13 = vpop.permute.xlu2 %374 }
  0x7e   : > { %v386_v22 = vpop.permute.xlu2 %385 }
  0x7f   : > { %v393_v26 = vmul.f32 %v392_v19, %v386_v22 }
  0x87   : > { %v424_v44 = vpop.permute.xlu2 %423 }
  0x8b   : > { %v367_v10 = vpop.permute.xlu0 %366  ;;  %v380_v11 = vpop.permute.xlu1 %379 }
  0x8c   : > { %v371_v21 = vmul.f32 %v369_v16, %v367_v10 }
  0x8e   : > { %v383_v27 = vadd.f32 %v380_v11, %v371_v21 }
  0x8f   : > { %v463_v50 = vpop.permute.xlu2 %462 }
  0x93   : > { %v362_v17 = vpop.permute.xlu0 %361 }
  0x94   : > { %v390_v18 = vpop.permute.xlu1 %389  ;;  %v370_v20 = vmul.f32 %v369_v16, %v362_v17 }
  0x95   : > { %v394_v23 = vmul.f32 %v392_v19, %v390_v18 }
  0x96   : > { %v382_v25 = vadd.f32 %v375_v13, %v370_v20 }
  0x97   : > { %v396_v29 = vadd.f32 %v394_v23, %v383_v27 }
  0x98   : > { %v395_v32 = vadd.f32 %v393_v26, %v382_v25 }
  0x9c   : > { %v403_v28 = vpop.permute.xlu0 %402 }
  0x9d   : > { %v407_v30 = vmul.f32 %v405_v24, %v403_v28  ;;  %v399_v31 = vpop.permute.xlu1 %398 }
  0x9e   : > { %v406_v33 = vmul.f32 %v405_v24, %v399_v31 }
  0x9f   : > { %v409_v34 = vadd.f32 %v407_v30, %v396_v29 }
  0xa0   : > { %v408_v35 = vadd.f32 %v406_v33, %v395_v32 }
  0xa1   : > { %v411_v36 = vmax.f32 %v409_v34, 0.0 }
  0xa2   : > { %v410_v37 = vmax.f32 %v408_v35, 0.0 }
  0xa3   : > { %447 = vmatpush.msra.mxu0 %v411_v36  ;;  %606 = vmatpush.msra.mxu2 %v411_v36 }
  0xa5   : > { %448 = vmatpush.msra.mxu0 %v410_v37  ;;  %607 = vmatpush.msra.mxu2 %v410_v37  ;;  %v493_v53 = vpop.permute.xlu0 %492 }
  0xa6   : > { %602 = vmatmul.msk.f32.vlgmr.msra.gmra.mxu2 %vm426_vm0, %v413_v38  ;;  %601 = vmatmul.msk.f32.vlgmr.msra.gmra.mxu0 %vm426_vm0, %v412_v39  ;;  %v419_v42 = vpop.permute.xlu1 %418 }
  0xae   : > { %v508_v61 = vpop.permute.xlu1 %507 }
  0xaf   : > { %v510_v63 = vperm.slane %v508_v61, 0 }
 0x123   : > { %v450_v41 = vpop.f32.mrf.mxu0 }
 0x124   : > { %v451_v43 = vadd.f32 %v450_v41, %v419_v42 }
 0x126   : > { %v456_v47 = vmax.f32 %v451_v43, 0.0 }
 0x129   : > { %v453_v45 = vpop.f32.mrf.mxu2 }
 0x12a   : > { %v454_v46 = vadd.f32 %v453_v45, %v424_v44 }
 0x12c   : > { %v457_v48 = vmax.f32 %v454_v46, 0.0 }
 0x12e   : > { %482 = vmatpush.msra.mxu1 %v457_v48 }
 0x130   : > { %483 = vmatpush.msra.mxu1 %v456_v47 }
 0x131   : > { %603 = vmatmul.msk.f32.vlgmr.msra.gmra.mxu1 %vm426_vm0, %v458_v49 }
 0x1ae   : > { %v485_v51 = vpop.f32.mrf.mxu1 }
 0x1af   : > { %v486_v52 = vadd.f32 %v485_v51, %v463_v50 }
 0x1b1   : > { %v488_v54 = vmax.f32 %v486_v52, 0.0 }
 0x1b3   : > { %v495_v55 = vmul.f32 %v493_v53, %v488_v54 }
 0x1b5   : > { %v497_v56 = vsel %vm496_vm1, %v495_v55, 0.0 }
 0x1b6   : > { %v498_v57 = vrot.slane %v497_v56, 4 }
 0x1b8   : > { %v499_v58 = vadd.f32 %v498_v57, %v497_v56 }
 0x1ba   : > { %v500_v59 = vrot.slane %v499_v58, 2 }
 0x1bc   : > { %v501_v60 = vadd.f32 %v500_v59, %v499_v58 }
 0x1be   : > { %v502_v62 = vrot.slane %v501_v60, 1 }
 0x1c0   : > { %v503_v0 = vadd.f32 %v502_v62, %v501_v60 }
 0x1c2   : > { %v511_v1 = vadd.f32 %v510_v63, %v503_v0 }
 0x1c4   : > { %513 = vst.msk [vmem:[%s346_s10] sm:$0x1] %vm512_vm2, %v511_v1 }
 0x1c5   : > { %703 = shalt.err (!%p700_p5)
}
 0x1c6   : > { %608 = dma.vmem_to_hbm [thread:$0]  (%p852_p4), %s527_s8, 16, %s529_s17, %s515_s19  }
 0x1c7 PF: > { %p614_p6 = scmp.ge.s32.totalorder %s754_s16, 2  ;;  %s540_s27 = sand.u32 1, %s734_s11  }
 0x1c8   : > { %s541_s30 = scalar_lea.sflag [#allocation4], %s540_s27 }
 0x1c9   : > { %p611_p7 = pnand %p614_p6, %p859_p8 }
 0x1cb   : > { %p612_p9 = pneg %p611_p7 }
 0x1cd   : > { %729 = dma.done.wait (%p612_p9), %s541_s30, 16  }
 0x1ce   : > { %731 = vsyncadd (%p612_p9), %s541_s30, 4294967280  ;;  %s24_s16 = sadd.s32 1, %s754_s16   ;;  %s957_s11 = smov %s738_s12 }
 0x1cf   : > { %p21_p10 = scmp.ge.s32.totalorder %s24_s16, 4   ;;  %s958_s12 = smov %s742_s13 }
 0x1d0   : > { %s959_s13 = smov %s865_s23  ;;  %s960_s14 = smov %s750_s15 }
 0x1d1   : > { %s961_s15 = smov %s963_s18  ;;  %23 = sbr.rel (!%p21_p10) target bundleno = 7 (0x7), region = 91 }
 0x1d6   :  { %546 = vsyncpa [#allocation4], 1 }
 0x1d7   :  { %548 = vsyncpa [#allocation4 + $0x1], 1 }

</bundles_post_ra>
